<compile_context>
chip_gen: v5e
topology: v5e:2x2
jax: 0.10.0
libtpu: 0.0.40
codegen_flags: <defaults>
</compile_context>

<pallas_src>
import functools

import jax
import jax.numpy as jnp
from jax.experimental import pallas as pl
from jax.experimental.pallas import tpu as pltpu


def bilinear_loss_kernel(e1_ref, e2_ref, w_ref, sel_ref, labels_ref,
                         logits_ref, loss_ref, *,
                         num_labels, valid_rows, normalize, mxu_dtype):
    """Fused (optional L2-norm) + bilinear logits + cross-entropy (mean).

    w_ref holds the pre-symmetrized per-label similarity matrices flattened to
    (D, L*D) with w[:, l*D:(l+1)*D] == Ms_l (stored in mxu_dtype).
    sel_ref is the lane-dense (L, L*D) block selector: sel[l, l*D:(l+1)*D] = 1.
    """
    e1 = e1_ref[...]                  # (Bp, D) f32
    e2 = e2_ref[...]                  # (Bp, D) f32
    Bp, D = e1.shape
    L = num_labels

    if normalize:
        # torch F.normalize(p=2): x / max(||x||, 1e-12).  rsqrt rides the EUP
        # slot, so fusing this here is effectively free vs. a separate HLO op.
        e1 = e1 * jax.lax.rsqrt(
            jnp.maximum(jnp.sum(e1 * e1, axis=1, keepdims=True), 1e-24))
        e2 = e2 * jax.lax.rsqrt(
            jnp.maximum(jnp.sum(e2 * e2, axis=1, keepdims=True), 1e-24))

    # Single fused MXU matmul: (Bp, D) x (D, L*D) -> (Bp, L*D), f32 accumulate.
    x = e2.astype(mxu_dtype)
    w = w_ref[...]                    # (D, L*D), already mxu_dtype
    p = jnp.dot(x, w, preferred_element_type=jnp.float32)     # (Bp, L*D) f32

    # Elementwise product with e1 replicated across the L lane-blocks (f32).
    q = p * jnp.concatenate([e1] * L, axis=1)                 # (Bp, L*D)

    # Per-label segmented reduction realized as a tiny second matmul against
    # the precomputed lane-dense selector (contract the lane axis of both,
    # i.e. q @ sel^T fused into the MXU; no in-kernel iota/reshape/relayout).
    sel = sel_ref[...]                                        # (L, L*D) f32
    logits = jax.lax.dot_general(
        q, sel, dimension_numbers=(((1,), (1,)), ((), ())),
        preferred_element_type=jnp.float32)                   # (Bp, L)
    logits_ref[...] = logits

    # Cross-entropy (mean over valid rows), max-stabilized log-softmax, all f32.
    mx = jnp.max(logits, axis=1, keepdims=True)                        # (Bp, 1)
    lse = mx + jnp.log(jnp.sum(jnp.exp(logits - mx), axis=1, keepdims=True))
    labels = labels_ref[...]                                           # (Bp, 1)
    lane = jax.lax.broadcasted_iota(jnp.int32, logits.shape, 1)        # (Bp, L)
    # NOTE: labels outside [0, L) silently yield picked=0 (loss=lse for that
    # row); PyTorch CrossEntropyLoss would raise on such labels.
    picked = jnp.sum(jnp.where(lane == labels, logits, 0.0), axis=1,
                     keepdims=True)                                    # (Bp, 1)
    per_example = lse - picked                                         # (Bp, 1)
    if valid_rows != Bp:
        row = jax.lax.broadcasted_iota(jnp.int32, per_example.shape, 0)
        per_example = jnp.where(row < valid_rows, per_example, 0.0)
    loss_ref[...] = (jnp.sum(per_example) / float(valid_rows)).reshape(1, 1)


def prepare_sim_weights(Us, sim_method="ADD", dtype=jnp.float32):
    """One-time weight prep: symmetrize + flatten (L, D, D) -> (D, L*D).

    Symmetrization happens here (amortized to ~zero when Us only change at the
    optimizer update), so the per-step kernel runs the plain bilinear form.
    Store as bf16 (dtype=jnp.bfloat16) to halve the dominant w_flat DMA.
    """
    L, D, _ = Us.shape
    Us = Us.astype(jnp.float32)
    if sim_method == "ADD":
        W = (Us + jnp.swapaxes(Us, 1, 2)) / 2.0
    elif sim_method == "MUL":
        W = jnp.einsum("lij,lkj->lik", Us, Us)    # U @ U^T per label
    else:
        W = Us
    # W_flat[:, l*D:(l+1)*D] == W[l]
    return jnp.transpose(W, (1, 0, 2)).reshape(D, L * D).astype(dtype)


def prepare_selector(num_labels, dim, dtype=jnp.float32):
    """Lane-dense (L, L*D) block-selector: sel[l, l*D:(l+1)*D] = 1."""
    r = jax.lax.broadcasted_iota(jnp.int32, (num_labels, num_labels * dim), 0)
    c = jax.lax.broadcasted_iota(jnp.int32, (num_labels, num_labels * dim), 1)
    return ((c >= r * dim) & (c < (r + 1) * dim)).astype(dtype)


def bilinear_loss(e1, e2, Us, labels, sim_method="ADD", normalization="",
                  w_flat=None, sel=None, mxu_dtype=jnp.float32):
    """Wrapper: weight/selector prep (hoistable) + one fused Pallas call."""
    B, D = e1.shape
    L = Us.shape[0]

    if w_flat is None:
        # Pass a precomputed w_flat (prepare_sim_weights) to hoist this out of
        # the per-step path; symmetrization is already folded in there.
        w_flat = prepare_sim_weights(Us, sim_method, dtype=mxu_dtype)
    else:
        w_flat = w_flat.astype(mxu_dtype)
    if sel is None:
        sel = prepare_selector(L, D)

    e1 = e1.astype(jnp.float32)
    e2 = e2.astype(jnp.float32)
    labels2d = labels.reshape(B, 1).astype(jnp.int32)

    # Pad batch to a sublane multiple so splits/stores stay tile-aligned.
    Bp = ((B + 7) // 8) * 8
    if Bp != B:
        e1 = jnp.pad(e1, ((0, Bp - B), (0, 0)))
        e2 = jnp.pad(e2, ((0, Bp - B), (0, 0)))
        labels2d = jnp.pad(labels2d, ((0, Bp - B), (0, 0)))

    normalize = bool(normalization)
    flops = 2 * Bp * D * (L * D) + 2 * Bp * (L * D) * L + 3 * Bp * L * D
    bytes_accessed = int(e1.nbytes + e2.nbytes + w_flat.nbytes + sel.nbytes
                         + labels2d.nbytes + 4 * (Bp * L + 1))
    transcendentals = Bp * (L + 1) + (2 * Bp if normalize else 0)

    kernel = functools.partial(
        bilinear_loss_kernel, num_labels=L, valid_rows=B,
        normalize=normalize, mxu_dtype=mxu_dtype)

    logits, loss = pl.pallas_call(
        kernel,
        out_shape=(
            jax.ShapeDtypeStruct((Bp, L), jnp.float32),   # bilinear logits
            jax.ShapeDtypeStruct((1, 1), jnp.float32),    # mean CE loss
        ),
        in_specs=[
            pl.BlockSpec(memory_space=pltpu.MemorySpace.VMEM),  # e1
            pl.BlockSpec(memory_space=pltpu.MemorySpace.VMEM),  # e2
            pl.BlockSpec(memory_space=pltpu.MemorySpace.VMEM),  # w_flat
            pl.BlockSpec(memory_space=pltpu.MemorySpace.VMEM),  # selector
            pl.BlockSpec(memory_space=pltpu.MemorySpace.VMEM),  # labels
        ],
        out_specs=(
            pl.BlockSpec(memory_space=pltpu.MemorySpace.VMEM),
            pl.BlockSpec(memory_space=pltpu.MemorySpace.VMEM),
        ),
        cost_estimate=pl.CostEstimate(flops=flops,
                                      transcendentals=transcendentals,
                                      bytes_accessed=bytes_accessed),
    )(e1, e2, w_flat, sel, labels2d)
    # TODO(synk): if B/D/L grow (w_flat past a few MiB), add a batch grid with
    # dimension_semantics=("parallel",) (2 TCs on v7x), tile the L*D column
    # axis of w_flat, and budget VMEM per generation (64 MiB v7x, 16 MiB
    # scoped default on v5e); also fuse d_logits = softmax - one_hot here for
    # the training backward.  Unnecessary at these shapes (~250 KiB total).
    return logits[:B], loss[0, 0]


def _reference(e1, e2, Us, labels, sim_method="ADD", normalization=""):
    """Pure-JAX reference mirroring the PyTorch forward, for verification."""
    e1 = e1.astype(jnp.float32)
    e2 = e2.astype(jnp.float32)
    if normalization:
        e1 = e1 / jnp.maximum(jnp.linalg.norm(e1, axis=1, keepdims=True), 1e-12)
        e2 = e2 / jnp.maximum(jnp.linalg.norm(e2, axis=1, keepdims=True), 1e-12)
    if sim_method == "ADD":
        Ms = (Us + jnp.swapaxes(Us, 1, 2)) / 2.0
    elif sim_method == "MUL":
        Ms = jnp.einsum("lij,lkj->lik", Us, Us)
    else:
        Ms = Us
    logits = jnp.stack(
        [jnp.sum(e1 * (e2 @ Ms[l]), axis=1) for l in range(Us.shape[0])], axis=1
    )
    logp = jax.nn.log_softmax(logits, axis=1)
    loss = -jnp.mean(logp[jnp.arange(e1.shape[0]), labels])
    return logits, loss


if __name__ == "__main__":
    B = 8            # batch of sentence pairs
    D = 128          # sentence embedding dimension
    L = 3            # num_labels (default in the module)

    key = jax.random.PRNGKey(0)
    k1, k2, k3, k4 = jax.random.split(key, 4)
    e1 = jax.random.normal(k1, (B, D), dtype=jnp.float32)     # sentence_embedding 1
    e2 = jax.random.normal(k2, (B, D), dtype=jnp.float32)     # sentence_embedding 2
    Us = jax.random.normal(k3, (L, D, D), dtype=jnp.float32)  # nn.ParameterList of (D,D)
    labels = jax.random.randint(k4, (B,), 0, L, dtype=jnp.int32)

    # Default path: sim_method='ADD', no normalization, f32 MXU operands.
    logits, loss = bilinear_loss(e1, e2, Us, labels, sim_method="ADD",
                                 normalization="")
    jax.block_until_ready((logits, loss))
    ref_logits, ref_loss = _reference(e1, e2, Us, labels)
    assert jnp.allclose(logits, ref_logits, rtol=1e-3, atol=1e-2), "logits mismatch"
    assert jnp.allclose(loss, ref_loss, rtol=1e-3, atol=1e-2), "loss mismatch"

    # Fused-normalization path.
    logits_n, loss_n = bilinear_loss(e1, e2, Us, labels, sim_method="ADD",
                                     normalization="l2")
    jax.block_until_ready((logits_n, loss_n))
    ref_logits_n, ref_loss_n = _reference(e1, e2, Us, labels, normalization="l2")
    assert jnp.allclose(logits_n, ref_logits_n, rtol=1e-3, atol=1e-2), \
        "normalized logits mismatch"
    assert jnp.allclose(loss_n, ref_loss_n, rtol=1e-3, atol=1e-2), \
        "normalized loss mismatch"

    # bf16-MXU-operand path (halves the w_flat DMA); smoke test only since the
    # f32 reference tolerances are too tight for bf16 inputs at these scales.
    logits_bf, loss_bf = bilinear_loss(e1, e2, Us, labels, sim_method="ADD",
                                       normalization="",
                                       mxu_dtype=jnp.bfloat16)
    jax.block_until_ready((logits_bf, loss_bf))
    assert bool(jnp.all(jnp.isfinite(logits_bf))) and bool(jnp.isfinite(loss_bf))

    print("KERNEL_OK")
</pallas_src>

<mosaic_0001>
module attributes {stable_mosaic.version = 11 : i64} {
  func.func @bilinear_loss_kernel(%arg0: memref<8x128xf32, #tpu.memory_space<vmem>>, %arg1: memref<8x128xf32, #tpu.memory_space<vmem>>, %arg2: memref<128x384xf32, #tpu.memory_space<vmem>>, %arg3: memref<3x384xf32, #tpu.memory_space<vmem>>, %arg4: memref<8x1xi32, #tpu.memory_space<vmem>>, %arg5: memref<8x3xf32, #tpu.memory_space<vmem>>, %arg6: memref<1x1xf32, #tpu.memory_space<vmem>>) attributes {dimension_semantics = [], scalar_prefetch = 0 : i64, scratch_operands = 0 : i64, tpu.core_type = #tpu.core_type<tc>} {
    %c0 = arith.constant 0 : index
    %c0_0 = arith.constant 0 : index
    %0 = vector.load %arg0[%c0, %c0_0] : memref<8x128xf32, #tpu.memory_space<vmem>>, vector<8x128xf32>
    %c0_1 = arith.constant 0 : index
    %c0_2 = arith.constant 0 : index
    %1 = vector.load %arg1[%c0_1, %c0_2] : memref<8x128xf32, #tpu.memory_space<vmem>>, vector<8x128xf32>
    %c0_3 = arith.constant 0 : index
    %c0_4 = arith.constant 0 : index
    %2 = vector.load %arg2[%c0_3, %c0_4] : memref<128x384xf32, #tpu.memory_space<vmem>>, vector<128x384xf32>
    %cst = arith.constant dense<0.000000e+00> : vector<8x384xf32>
    %3 = tpu.matmul %1, %2, %cst {dimension_numbers = #tpu.dot_dimension_numbers<[1], [0], [0], [1], [0, 0, 1, 1], [], []>} : vector<8x128xf32>, vector<128x384xf32>, vector<8x384xf32> -> vector<8x384xf32>
    %4 = tpu.concatenate %0, %0, %0 in 1 : vector<8x128xf32>, vector<8x128xf32>, vector<8x128xf32> -> vector<8x384xf32>
    %5 = arith.mulf %3, %4 : vector<8x384xf32>
    %c0_5 = arith.constant 0 : index
    %c0_6 = arith.constant 0 : index
    %6 = vector.load %arg3[%c0_5, %c0_6] : memref<3x384xf32, #tpu.memory_space<vmem>>, vector<3x384xf32>
    %cst_7 = arith.constant dense<0.000000e+00> : vector<8x3xf32>
    %7 = tpu.matmul %5, %6, %cst_7 {dimension_numbers = #tpu.dot_dimension_numbers<[1], [1], [0], [0], [0, 0, 1, 0], [], []>} : vector<8x384xf32>, vector<3x384xf32>, vector<8x3xf32> -> vector<8x3xf32>
    %c0_8 = arith.constant 0 : index
    %c0_9 = arith.constant 0 : index
    %8 = vector.load %arg5[%c0_8, %c0_9] : memref<8x3xf32, #tpu.memory_space<vmem>>, vector<8x3xf32>
    tpu.vector_store %arg5[%c0_8, %c0_9], %7 {strides = array<i32>} : memref<8x3xf32, #tpu.memory_space<vmem>>, vector<8x3xf32>,
    %cst_10 = arith.constant dense<0xFF800000> : vector<8xf32>
    %9 = vector.multi_reduction <maximumf>, %7, %cst_10 [1] : vector<8x3xf32> to vector<8xf32>
    %10 = vector.shape_cast %9 : vector<8xf32> to vector<8x1xf32>
    %11 = vector.broadcast %10 : vector<8x1xf32> to vector<8x3xf32>
    %12 = arith.subf %7, %11 : vector<8x3xf32>
    %13 = math.exp %12 : vector<8x3xf32>
    %cst_11 = arith.constant dense<0.000000e+00> : vector<8xf32>
    %14 = vector.multi_reduction <add>, %13, %cst_11 [1] : vector<8x3xf32> to vector<8xf32>
    %15 = vector.shape_cast %14 : vector<8xf32> to vector<8x1xf32>
    %16 = math.log %15 : vector<8x1xf32>
    %17 = arith.addf %10, %16 : vector<8x1xf32>
    %c0_12 = arith.constant 0 : index
    %c0_13 = arith.constant 0 : index
    %18 = vector.load %arg4[%c0_12, %c0_13] : memref<8x1xi32, #tpu.memory_space<vmem>>, vector<8x1xi32>
    %19 = tpu.iota {dimensions = array<i32: 1>} : vector<8x3xi32>
    %20 = vector.broadcast %18 : vector<8x1xi32> to vector<8x3xi32>
    %21 = arith.cmpi eq, %19, %20 : vector<8x3xi32>
    %cst_14 = arith.constant 0.000000e+00 : f32
    %22 = vector.broadcast %cst_14 : f32 to vector<8x3xf32>
    %23 = arith.select %21, %7, %22 : vector<8x3xi1>, vector<8x3xf32>
    %cst_15 = arith.constant dense<0.000000e+00> : vector<8xf32>
    %24 = vector.multi_reduction <add>, %23, %cst_15 [1] : vector<8x3xf32> to vector<8xf32>
    %25 = vector.shape_cast %24 : vector<8xf32> to vector<8x1xf32>
    %26 = arith.subf %17, %25 : vector<8x1xf32>
    %27 = vector.shape_cast %26 : vector<8x1xf32> to vector<1x8x1xf32>
    %cst_16 = arith.constant dense<0.000000e+00> : vector<1xf32>
    %28 = vector.multi_reduction <add>, %27, %cst_16 [1, 2] : vector<1x8x1xf32> to vector<1xf32>
    %29 = vector.shape_cast %28 : vector<1xf32> to vector<1x1x1xf32>
    %30 = vector.extract %29[0, 0, 0] : f32 from vector<1x1x1xf32>
    %cst_17 = arith.constant 8.000000e+00 : f32
    %31 = arith.divf %30, %cst_17 : f32
    %32 = vector.broadcast %31 : f32 to vector<1x1xf32>
    %c0_18 = arith.constant 0 : index
    %c0_19 = arith.constant 0 : index
    %33 = vector.load %arg6[%c0_18, %c0_19] : memref<1x1xf32, #tpu.memory_space<vmem>>, vector<1x1xf32>
    tpu.vector_store %arg6[%c0_18, %c0_19], %32 {strides = array<i32>} : memref<1x1xf32, #tpu.memory_space<vmem>>, vector<1x1xf32>,
    return
  }
}

</mosaic_0001>

<bundles_post_ra>
// kernel: tpu_custom_call.1
= control target key start
LH: loop header
LB: loop body
LE: loop exit
PB: predicated region body
PF: predicated region fallthrough
CT: control target
= control target key end

     0   :  { %12 = vsyncpa [#allocation3], 0  ;;  %s512_s0 = inlined_call_operand.vmem [shape: f32[8,128], index: 0, kind: input, shape index: {}]   ;;  %s513_s1 = inlined_call_operand.hbm [shape: f32[8,128], index: 1, kind: input, shape index: {}]   ;;  %s514_s2 = inlined_call_operand.hbm [shape: f32[128,384], index: 2, kind: input, shape index: {}]   ;;  %s515_s3 = inlined_call_operand.hbm [shape: f32[3,384], index: 3, kind: input, shape index: {}]   ;;  %s516_s4 = inlined_call_operand.vmem [shape: s32[8,1], index: 4, kind: input, shape index: {}]   ;;  %s517_s5 = inlined_call_operand.vmem [shape: f32[8,3], index: 5, kind: output, shape index: {0}]   ;;  %s518_s6 = inlined_call_operand.hbm [shape: f32[1,1], index: 6, kind: output, shape index: {1}]  }
   0x1   :  { %13 = vsyncpa [#allocation6], 0  ;;  %s32_s23 = sshll.u32 %s514_s2, 4  ;;  %s33_s23 = int_to_ptr.hbm [resolvable:$true] %s32_s23 }
   0x2   :  { %14 = vsyncpa [#allocation4], 0  ;;  %s444_s24 = smov [#allocation5]   ;;  %s22_s28 = sshll.u32 %s513_s1, 4  ;;  %s23_s28 = int_to_ptr.hbm [resolvable:$true] %s22_s28 }
   0x3   :  { %s34_s25 = sshll.u32 %s444_s24, 4  ;;  %s445_s29 = smov 384   ;;  %s35_s25 = int_to_ptr.vmem [resolvable:$true] %s34_s25 }
   0x4   :  { %s446_s30 = smov 24   ;;  %s447_s7 = smov [#allocation2]  }
   0x5   :  { %40 = dma.hbm_to_vmem [thread:$0]  %s33_s23, 6144, %s35_s25, [#allocation6], %s445_s29, %s445_s29, %s446_s30  }
   0x6   :  { %s24_s8 = sshll.u32 %s447_s7, 4  ;;  %s46_s11 = sshll.u32 %s515_s3, 4  ;;  %s25_s8 = int_to_ptr.vmem [resolvable:$true] %s24_s8  ;;  %s47_s11 = int_to_ptr.hbm [resolvable:$true] %s46_s11 }
   0x7   :  { %27 = dma.hbm_to_vmem [thread:$0]  %s23_s28, 128, %s25_s8, [#allocation3]  }
   0x8   :  { %s448_s2 = smov [#allocation7]  }
   0x9   :  { %s48_s12 = sshll.u32 %s448_s2, 4  ;;  %s49_s12 = int_to_ptr.vmem [resolvable:$true] %s48_s12 }
   0xa   :  { %51 = dma.hbm_to_vmem [thread:$0]  %s47_s11, 192, %s49_s12, [#allocation6]  }
   0xb   :  { %438 = dma.done.wait [#allocation3], 128  }
   0xc   :  { %439 = vsyncadd [#allocation3], 4294967168 }
   0xd   :  { %440 = dma.done.wait [#allocation6], 6336  }
   0xe   :  { %441 = vsyncadd [#allocation6], 4294960960  ;;  %v113_v0 = vld [vmem:[#allocation5 + $0x168] sm:$0xff]  ;;  %v110_v1 = vld [vmem:[#allocation5 + $0x150] sm:$0xff]  ;;  %v449_v61 = vmov 0   ;;  %vm252_vm0 = vcmask 23552  }
   0xf   :  { %116 = vmatpush.msra.mxu0 %v113_v0  ;;  %v114_v2 = vld [vmem:[#allocation5 + $0x170] sm:$0xff]  ;;  %v107_v3 = vld [vmem:[#allocation5 + $0x138] sm:$0xff]  ;;  %v108_v6 = vld [vmem:[#allocation5 + $0x140] sm:$0xff]  ;;  %335 = vset.pattern.permute.xlu0 %v449_v61  ;;  %vm278_vm2 = vcmask 7168   ;;  %s310_s19 = sshll.u32 %s518_s6, 4  ;;  %vm299_vm4 = vcmask 0   ;;  %s311_s19 = int_to_ptr.hbm [resolvable:$true] %s310_s19 }
  0x10   :  { %136 = vmatpush.msra.mxu1 %v114_v2  ;;  %v111_v4 = vld [vmem:[#allocation5 + $0x158] sm:$0xff]  ;;  %v112_v7 = vld [vmem:[#allocation5 + $0x160] sm:$0xff]  ;;  %v109_v9 = vld [vmem:[#allocation5 + $0x148] sm:$0xff] }
  0x11   :  { %v115_v5 = vld [vmem:[#allocation5 + $0x178] sm:$0xff]  ;;  %117 = vmatpush.msra.mxu0 %v110_v1  ;;  %v104_v8 = vld [vmem:[#allocation5 + $0x120] sm:$0xff]  ;;  %v105_v10 = vld [vmem:[#allocation5 + $0x128] sm:$0xff] }
  0x12   :  { %156 = vmatpush.msra.mxu2 %v115_v5  ;;  %137 = vmatpush.msra.mxu1 %v111_v4  ;;  %v101_v11 = vld [vmem:[#allocation5 + $0x108] sm:$0xff]  ;;  %v106_v12 = vld [vmem:[#allocation5 + $0x130] sm:$0xff]  ;;  %v103_v15 = vld [vmem:[#allocation5 + $0x118] sm:$0xff] }
  0x13   :  { %118 = vmatpush.msra.mxu0 %v107_v3  ;;  %v102_v13 = vld [vmem:[#allocation5 + $0x110] sm:$0xff]  ;;  %v99_v16 = vld [vmem:[#allocation5 + $0xf8] sm:$0xff]  ;;  %v100_v18 = vld [vmem:[#allocation5 + $0x100] sm:$0xff] }
  0x14   :  { %157 = vmatpush.msra.mxu2 %v112_v7  ;;  %138 = vmatpush.msra.mxu1 %v108_v6  ;;  %v98_v14 = vld [vmem:[#allocation5 + $0xf0] sm:$0xff]  ;;  %v95_v17 = vld [vmem:[#allocation5 + $0xd8] sm:$0xff]  ;;  %v96_v19 = vld [vmem:[#allocation5 + $0xe0] sm:$0xff] }
  0x15   :  { %119 = vmatpush.msra.mxu0 %v104_v8  ;;  %v92_v20 = vld [vmem:[#allocation5 + $0xc0] sm:$0xff]  ;;  %v97_v21 = vld [vmem:[#allocation5 + $0xe8] sm:$0xff]  ;;  %v94_v24 = vld [vmem:[#allocation5 + $0xd0] sm:$0xff] }
  0x16   :  { %158 = vmatpush.msra.mxu2 %v109_v9  ;;  %139 = vmatpush.msra.mxu1 %v105_v10  ;;  %v93_v22 = vld [vmem:[#allocation5 + $0xc8] sm:$0xff]  ;;  %v90_v25 = vld [vmem:[#allocation5 + $0xb0] sm:$0xff]  ;;  %v91_v27 = vld [vmem:[#allocation5 + $0xb8] sm:$0xff]  ;;  %v267_v10 = vlaneseq }
  0x17   :  { %120 = vmatpush.msra.mxu0 %v101_v11  ;;  %v89_v23 = vld [vmem:[#allocation5 + $0xa8] sm:$0xff]  ;;  %v86_v26 = vld [vmem:[#allocation5 + $0x90] sm:$0xff]  ;;  %v87_v28 = vld [vmem:[#allocation5 + $0x98] sm:$0xff] }
  0x18   :  { %159 = vmatpush.msra.mxu2 %v106_v12  ;;  %140 = vmatpush.msra.mxu1 %v102_v13  ;;  %v83_v29 = vld [vmem:[#allocation5 + $0x78] sm:$0xff]  ;;  %v88_v30 = vld [vmem:[#allocation5 + $0xa0] sm:$0xff]  ;;  %v85_v33 = vld [vmem:[#allocation5 + $0x88] sm:$0xff]  ;;  %v268_v11 = vand.u32 127, %v267_v10 }
  0x19   :  { %121 = vmatpush.msra.mxu0 %v98_v14  ;;  %v84_v31 = vld [vmem:[#allocation5 + $0x80] sm:$0xff]  ;;  %v81_v34 = vld [vmem:[#allocation5 + $0x68] sm:$0xff]  ;;  %v82_v36 = vld [vmem:[#allocation5 + $0x70] sm:$0xff] }
  0x1a   :  { %160 = vmatpush.msra.mxu2 %v103_v15  ;;  %141 = vmatpush.msra.mxu1 %v99_v16  ;;  %v80_v32 = vld [vmem:[#allocation5 + $0x60] sm:$0xff]  ;;  %v77_v35 = vld [vmem:[#allocation5 + $0x48] sm:$0xff]  ;;  %v78_v37 = vld [vmem:[#allocation5 + $0x50] sm:$0xff] }
  0x1b   :  { %122 = vmatpush.msra.mxu0 %v95_v17  ;;  %v74_v38 = vld [vmem:[#allocation5 + $0x30] sm:$0xff]  ;;  %v79_v39 = vld [vmem:[#allocation5 + $0x58] sm:$0xff]  ;;  %v76_v42 = vld [vmem:[#allocation5 + $0x40] sm:$0xff] }
  0x1c   :  { %161 = vmatpush.msra.mxu2 %v100_v18  ;;  %142 = vmatpush.msra.mxu1 %v96_v19  ;;  %v75_v40 = vld [vmem:[#allocation5 + $0x38] sm:$0xff]  ;;  %v72_v43 = vld [vmem:[#allocation5 + $0x20] sm:$0xff]  ;;  %v73_v45 = vld [vmem:[#allocation5 + $0x28] sm:$0xff] }
  0x1d   :  { %123 = vmatpush.msra.mxu0 %v92_v20  ;;  %v71_v41 = vld [vmem:[#allocation5 + $0x18] sm:$0xff]  ;;  %v68_v44 = vld [vmem:[#allocation5] sm:$0xff]  ;;  %v69_v47 = vld [vmem:[#allocation5 + $0x8] sm:$0xff] }
  0x1e   :  { %162 = vmatpush.msra.mxu2 %v97_v21  ;;  %143 = vmatpush.msra.mxu1 %v93_v22  ;;  %v67_v46 = vld [vmem:[#allocation2] sm:$0xff]  ;;  %v70_v48 = vld [vmem:[#allocation5 + $0x10] sm:$0xff]  ;;  %v179_v49 = vld [vmem:[#allocation7] sm:$0x77]  ;;  %v450_v22 = vmov 8.0  }
  0x1f   :  { %124 = vmatpush.msra.mxu0 %v89_v23  ;;  %183 = vst [vmem:[#allocation1] ss:$2 sm:$0xff] %v179_v49  ;;  %v180_v52 = vld [vmem:[#allocation7 + $0x8] sm:$0x7]  ;;  %v66_v53 = vld [vmem:[%s512_s0] sm:$0xff] }
  0x20   :  { %163 = vmatpush.msra.mxu2 %v94_v24  ;;  %144 = vmatpush.msra.mxu1 %v90_v25  ;;  %185 = vst [vmem:[#allocation1 + $0x10] ss:$2 sm:$0xff] %v180_v52  ;;  %v266_v4 = vld [vmem:[%s516_s4] sm:$0xff]  ;;  %s451_s4 = smov [#allocation8]  }
  0x21   :  { %125 = vmatpush.msra.mxu0 %v86_v26 }
  0x22   :  { %164 = vmatpush.msra.mxu2 %v91_v27  ;;  %145 = vmatpush.msra.mxu1 %v87_v28 }
  0x23   :  { %126 = vmatpush.msra.mxu0 %v83_v29 }
  0x24   :  { %165 = vmatpush.msra.mxu2 %v88_v30  ;;  %146 = vmatpush.msra.mxu1 %v84_v31 }
  0x25   :  { %127 = vmatpush.msra.mxu0 %v80_v32 }
  0x26   :  { %166 = vmatpush.msra.mxu2 %v85_v33  ;;  %147 = vmatpush.msra.mxu1 %v81_v34  ;;  %v186_v50 = vld.sshfl [vmem:[#allocation1] sm:$0xff pattern:$0x75316420]  ;;  %v187_v51 = vld.sshfl [vmem:[#allocation1 + $0x8] sm:$0xff pattern:$0x75316420] }
  0x27   :  { %128 = vmatpush.msra.mxu0 %v77_v35  ;;  %207 = vmatpush.xpose.msra.mxu3 %v186_v50  ;;  %v188_v56 = vld.sshfl [vmem:[#allocation1 + $0x10] sm:$0xff pattern:$0x75316420] }
  0x28   :  { %167 = vmatpush.msra.mxu2 %v82_v36  ;;  %148 = vmatpush.msra.mxu1 %v78_v37 }
  0x29   :  { %129 = vmatpush.msra.mxu0 %v74_v38 }
  0x2a   :  { %168 = vmatpush.msra.mxu2 %v79_v39  ;;  %149 = vmatpush.msra.mxu1 %v75_v40 }
  0x2b   :  { %130 = vmatpush.msra.mxu0 %v71_v41  ;;  %227 = vmatpush.xpose.msrb.mxu3 %v187_v51 }
  0x2c   :  { %169 = vmatpush.msra.mxu2 %v76_v42  ;;  %150 = vmatpush.msra.mxu1 %v72_v43 }
  0x2d   :  { %131 = vmatpush.msra.mxu0 %v68_v44 }
  0x2e   :  { %170 = vmatpush.msra.mxu2 %v73_v45  ;;  %132 = vmatmul.f32.vlgmr.msra.gmra.mxu0 %v67_v46 }
  0x2f   :  { %151 = vmatpush.msra.mxu1 %v69_v47 }
  0x30   :  { %152 = vmatmul.f32.vlgmr.msra.gmra.mxu1 %v67_v46  ;;  %171 = vmatpush.msra.mxu2 %v70_v48 }
  0x31   :  { %172 = vmatmul.f32.vlgmr.msra.gmra.mxu2 %v67_v46 }
  0xab   :  { %v133_v54 = vpop.f32.mrf.mxu0 }
  0xac   :  { %v176_v55 = vmul.f32 %v133_v54, %v66_v53 }
  0xad   :  { %v153_v57 = vpop.f32.mrf.mxu1 }
  0xae   :  { %208 = vmatmul.f32.vlgmr.msra.gmra.mxu3 %v176_v55  ;;  %v177_v58 = vmul.f32 %v153_v57, %v66_v53 }
  0xaf   :  { %247 = vmatpush.xpose.msra.mxu3 %v188_v56 }
  0xb4   :  { %v173_v59 = vpop.f32.mrf.mxu2 }
  0xb5   :  { %v178_v60 = vmul.f32 %v173_v59, %v66_v53 }
  0xb6   :  { %228 = vmatmul.f32.vlgmr.msrb.gmra.mxu3 %v177_v58 }
  0xbe   :  { %248 = vmatmul.f32.vlgmr.msra.gmra.mxu3 %v178_v60 }
 0x131   :  { %v209_v62 = vpop.f32.mrf.mxu3 }
 0x139   :  { %v229_v63 = vpop.f32.mrf.mxu3 }
 0x13a   :  { %v230_v0 = vadd.f32 %v229_v63, %v209_v62 }
 0x141   :  { %v249_v1 = vpop.f32.mrf.mxu3 }
 0x142   :  { %v250_v2 = vadd.f32 %v249_v1, %v230_v0 }
 0x144   :  { %v254_v3 = vsel %vm252_vm0, %v250_v2, -inf  ;;  %253 = vst.msk [vmem:[%s517_s5] sm:$0xff] %vm252_vm0, %v250_v2  ;;  %s308_s5 = sshll.u32 %s451_s4, 4  ;;  %s309_s5 = int_to_ptr.vmem [resolvable:$true] %s308_s5 }
 0x145   :  { %255 = vmax.xlane.f32.xlu0 %v254_v3 }
 0x159   :  { %270 = vperm.xlu0 %335, %v266_v4  }
 0x1b8   :  { %v256_v5 = vpop.xlane.xlu0 %255 }
 0x1b9   :  { %v257_v6 = vsub.f32 %v250_v2, %v256_v5 }
 0x1bb   :  { %v258_v7 = vmul.f32 1.442695, %v257_v6 }
 0x1bd   :  { %336 = vpow2.f32 %v258_v7 }
 0x1c3   :  { %v337_v8 = vpop.eup %336 }
 0x1c4   :  { %v260_v9 = vsel %vm252_vm0, %v337_v8, 0.0 }
 0x1c5   :  { %261 = vadd.xlane.f32.xlu1 %v260_v9 }
 0x1cb   :  { %v271_v12 = vpop.permute.xlu0 %270 }
 0x1cc   :  { %vm272_vm1 = vcmp.eq.s32.totalorder %v268_v11, %v271_v12 }
 0x1cd   :  { %v273_v13 = vsel %vm272_vm1, %v250_v2, 0.0 }
 0x1ce   :  { %v274_v14 = vsel %vm252_vm0, %v273_v13, 0.0 }
 0x1cf   :  { %275 = vadd.xlane.f32.xlu1 %v274_v14 }
 0x238   :  { %v262_v15 = vpop.xlane.xlu1 %261 }
 0x239   :  { %338 = vlog2.f32 %v262_v15 }
 0x23a   :  { %340 = vrcp.f32 %v450_v22 }
 0x23f   :  { %v339_v16 = vpop.eup %338 }
 0x240   :  { %v264_v17 = vmul.f32 0.6931472, %v339_v16  ;;  %v341_v23 = vpop.eup %340 }
 0x241   :  { %v290_v24 = vmul.f32 8.0, %v341_v23  ;;  %vm294_vm3 = vweird.f32 %v341_v23 }
 0x242   :  { %v265_v18 = vadd.f32 %v264_v17, %v256_v5  ;;  %v276_v19 = vpop.xlane.xlu1 %275 }
 0x243   :  { %v291_v25 = vsub.f32 1.0, %v290_v24 }
 0x244   :  { %v277_v20 = vsub.f32 %v265_v18, %v276_v19 }
 0x245   :  { %v292_v29 = vmul.f32 %v341_v23, %v291_v25 }
 0x246   :  { %v279_v21 = vsel %vm278_vm2, %v277_v20, 0.0 }
 0x247   :  { %280 = vadd.xlane.f32.xlu2 %v279_v21  ;;  %v293_v32 = vadd.f32 %v341_v23, %v292_v29 }
 0x249   :  { %v295_v35 = vsel %vm294_vm3, %v341_v23, %v293_v32 }
 0x2ba   :  { %v281_v26 = vpop.xlane.xlu2 %280 }
 0x2bb   :  { %v282_v27 = vrot.slane %v281_v26, 4 }
 0x2bd   :  { %v283_v28 = vadd.f32 %v282_v27, %v281_v26 }
 0x2bf   :  { %v284_v30 = vrot.slane %v283_v28, 2 }
 0x2c1   :  { %v285_v31 = vadd.f32 %v284_v30, %v283_v28 }
 0x2c3   :  { %v286_v33 = vrot.slane %v285_v31, 1 }
 0x2c5   :  { %v287_v34 = vadd.f32 %v286_v33, %v285_v31 }
 0x2c7   :  { %323 = vpush %v287_v34 }
 0x2c8   :  { %325 = vpush %v295_v35 }
 0x2f8   :  { %s324_s16 = spop %323 }
 0x2f9   :  { %s326_s20 = spop %325 }
 0x2fa   :  { %s297_s21 = smul.f32 %s326_s20, %s324_s16 }
 0x2fc   :  { %v298_v36 = vstv %s297_s21 }
 0x2fd   :  { %300 = vst.msk [vmem:[#allocation8] sm:$0x1] %vm299_vm4, %v298_v36 }
 0x2fe   :  { %313 = dma.vmem_to_hbm [thread:$0]  %s309_s5, 16, %s311_s19, [#allocation4]  }
 0x2ff   :  { %442 = dma.done.wait [#allocation4], 16  }
 0x300   :  { %443 = vsyncadd [#allocation4], 4294967280 }
 0x301   :  { %320 = vsyncpa [#allocation3], 1 }
 0x302   :  { %321 = vsyncpa [#allocation6], 1 }
 0x303   :  { %322 = vsyncpa [#allocation4], 1 }

</bundles_post_ra>
